<compile_context>
chip_gen: v7x
topology: tpu7x:2x2x1
jax: 0.10.0
libtpu: 0.0.40
codegen_flags: <defaults>
</compile_context>

<pallas_src>
import jax
import jax.numpy as jnp
from jax.experimental import pallas as pl
from jax.experimental.pallas import tpu as pltpu


def _sigmoid_up_kernel(x_ref, o_ref):
    # (sigmoid(x) + 1) / 2 == 0.75 + 0.25 * tanh(x / 2)   (exact identity)
    xf = x_ref[...].astype(jnp.float32)
    o_ref[...] = (0.75 + 0.25 * jnp.tanh(0.5 * xf)).astype(o_ref.dtype)


def _sublane_multiple(dtype) -> int:
    # packed sublane tile: 8 for 32-bit, 16 for 16-bit, 32 for 8-bit dtypes
    itemsize = jnp.dtype(dtype).itemsize
    return max(8, 8 * (4 // max(1, itemsize)))


def _round_up(a, b):
    return ((a + b - 1) // b) * b


def _cdiv(a, b):
    return -(-a // b)


def _choose_block_rows(rows, lanes, itemsize, sub, target_block_bytes):
    """Pick block_rows: ~target bytes, sublane-aligned, balanced for small grids."""
    if rows <= 2 * sub:
        # Single full-extent block (block shape == array shape, always legal).
        return rows
    br = max(sub, (target_block_bytes // (lanes * itemsize)) // sub * sub)
    br = min(br, _round_up(rows, sub))
    steps = _cdiv(rows, br)
    if steps <= 4:
        # Small grid: use an even, near-equal split so the "parallel" axis
        # shards evenly across v7x's two TensorCores (neutral on v5e/v6e).
        if steps == 1:
            steps = 2
        elif steps % 2:
            steps += 1
        br = max(sub, _round_up(_cdiv(rows, steps), sub))
    return br


def _run_2d(x2d, block_rows):
    rows, lanes = x2d.shape
    itemsize = jnp.dtype(x2d.dtype).itemsize
    block_bytes = block_rows * lanes * itemsize
    # 2 double-buffered copies of (input + output) blocks, plus margin.
    # Floor at 16 MiB (v5e scoped default), cap at 32 MiB (safe on v7x's
    # 64 MiB physical VMEM per TensorCore).
    vmem_limit = int(min(32 << 20, max(16 << 20, 4 * block_bytes + (2 << 20))))
    grid = (pl.cdiv(rows, block_rows),)
    return pl.pallas_call(
        _sigmoid_up_kernel,
        out_shape=jax.ShapeDtypeStruct((rows, lanes), x2d.dtype),
        grid_spec=pltpu.PrefetchScalarGridSpec(
            num_scalar_prefetch=0,
            grid=grid,
            in_specs=[pl.BlockSpec((block_rows, lanes), lambda i: (i, 0))],
            out_specs=pl.BlockSpec((block_rows, lanes), lambda i: (i, 0)),
        ),
        compiler_params=pltpu.CompilerParams(
            dimension_semantics=("parallel",),
            vmem_limit_bytes=vmem_limit,
        ),
    )(x2d)


def sigmoid_up(x, *, target_block_bytes=4 << 20):
    """Elementwise (sigmoid(x)+1)/2 via a Pallas TPU kernel. Accepts any shape."""
    orig_shape = x.shape
    dtype = x.dtype
    if not jnp.issubdtype(dtype, jnp.floating):
        raise TypeError(f"sigmoid_up expects a floating-point input, got {dtype}")
    n = x.size
    if n == 0:
        return x

    itemsize = jnp.dtype(dtype).itemsize
    sub = _sublane_multiple(dtype)

    # Widest lane width (multiple of 128) that divides n: the reshape is free
    # and no padding / extra HBM traffic is needed. Rows need not be a sublane
    # multiple — only block_rows must be (partial last block is masked).
    lanes = None
    for c in (2048, 1024, 512, 256, 128):
        if n % c == 0:
            lanes = c
            break

    flat = jnp.ravel(x)

    if lanes is None:
        # Ragged path: run the kernel on the lane-aligned bulk; compute the
        # (<128-element) tail with plain jnp. No padded copy of the tensor.
        lanes = 128
        bulk = (n // lanes) * lanes
        tail = flat[bulk:]
        tail_out = (0.75 + 0.25 * jnp.tanh(0.5 * tail.astype(jnp.float32))).astype(dtype)
        if bulk == 0:
            return tail_out.reshape(orig_shape)
        rows = bulk // lanes
        bulk_2d = flat[:bulk].reshape(rows, lanes)
        br = _choose_block_rows(rows, lanes, itemsize, sub, target_block_bytes)
        out_bulk = _run_2d(bulk_2d, br)
        return jnp.concatenate([out_bulk.reshape(-1), tail_out]).reshape(orig_shape)

    rows = n // lanes
    x2d = flat.reshape(rows, lanes)
    br = _choose_block_rows(rows, lanes, itemsize, sub, target_block_bytes)
    return _run_2d(x2d, br).reshape(orig_shape)


if __name__ == "__main__":
    key = jax.random.PRNGKey(0)
    # NCHW input consistent with a typical conv-style module: batch=2, C=4, H=W=16
    x = jax.random.normal(key, (2, 4, 16, 16), dtype=jnp.float32)

    y = sigmoid_up(x)
    jax.block_until_ready(y)

    ref = (jax.nn.sigmoid(x) + 1.0) / 2.0
    assert y.shape == x.shape and y.dtype == x.dtype
    assert jnp.allclose(y, ref, atol=1e-6, rtol=1e-6), "mismatch vs reference"

    # Exercise the ragged (non-128-divisible) path: 3*171 = 513 elements.
    k2 = jax.random.PRNGKey(1)
    x2 = jax.random.normal(k2, (3, 171), dtype=jnp.float32)
    y2 = sigmoid_up(x2)
    jax.block_until_ready(y2)
    ref2 = (jax.nn.sigmoid(x2) + 1.0) / 2.0
    assert y2.shape == x2.shape and y2.dtype == x2.dtype
    assert jnp.allclose(y2, ref2, atol=1e-6, rtol=1e-6), "ragged-path mismatch"

    print("KERNEL_OK")
</pallas_src>

<mosaic_0001>
module attributes {stable_mosaic.version = 11 : i64} {
  func.func @_sigmoid_up_kernel(%arg0: i32, %arg1: memref<1x2048xf32, #tpu.memory_space<vmem>>, %arg2: memref<1x2048xf32, #tpu.memory_space<vmem>>) attributes {dimension_semantics = [#tpu.dimension_semantics<parallel>], iteration_bounds = array<i64: 1>, scalar_prefetch = 0 : i64, scratch_operands = 0 : i64, tpu.core_type = #tpu.core_type<tc>, window_params = [{transform_indices = @transform_0, window_bounds = array<i64: 1, 2048>}, {transform_indices = @transform_1, window_bounds = array<i64: 1, 2048>}]} {
    %c0 = arith.constant 0 : index
    %c0_0 = arith.constant 0 : index
    %0 = vector.load %arg1[%c0, %c0_0] : memref<1x2048xf32, #tpu.memory_space<vmem>>, vector<1x2048xf32>
    %cst = arith.constant 5.000000e-01 : f32
    %1 = vector.broadcast %cst : f32 to vector<1x2048xf32>
    %2 = arith.mulf %1, %0 : vector<1x2048xf32>
    %3 = math.tanh %2 : vector<1x2048xf32>
    %cst_1 = arith.constant 2.500000e-01 : f32
    %4 = vector.broadcast %cst_1 : f32 to vector<1x2048xf32>
    %5 = arith.mulf %4, %3 : vector<1x2048xf32>
    %cst_2 = arith.constant 7.500000e-01 : f32
    %6 = vector.broadcast %cst_2 : f32 to vector<1x2048xf32>
    %7 = arith.addf %6, %5 : vector<1x2048xf32>
    %c0_3 = arith.constant 0 : index
    %c0_4 = arith.constant 0 : index
    %8 = vector.load %arg2[%c0_3, %c0_4] : memref<1x2048xf32, #tpu.memory_space<vmem>>, vector<1x2048xf32>
    tpu.vector_store %arg2[%c0_3, %c0_4], %7 {strides = array<i32>} : memref<1x2048xf32, #tpu.memory_space<vmem>>, vector<1x2048xf32>,
    return
  }
  func.func @transform_0(%arg0: i32) -> (i32, i32) {
    %c0_i32 = arith.constant 0 : i32
    %c0_i32_0 = arith.constant 0 : i32
    return %arg0, %c0_i32 : i32, i32
  }
  func.func @transform_1(%arg0: i32) -> (i32, i32) {
    %c0_i32 = arith.constant 0 : i32
    %c0_i32_0 = arith.constant 0 : i32
    return %arg0, %c0_i32 : i32, i32
  }
}

</mosaic_0001>

<bundles_post_ra>
// kernel: tpu_custom_call.1
= control target key start
LH: loop header
LB: loop body
LE: loop exit
PB: predicated region body
PF: predicated region fallthrough
CT: control target
= control target key end

     0   :  { %6 = vsyncpa [#allocation3], 0  ;;  %s138_s0 = inlined_call_operand.hbm [shape: f32[1,2048], index: 0, kind: input, shape index: {}]   ;;  %s139_s1 = inlined_call_operand.hbm [shape: f32[1,2048], index: 1, kind: output, shape index: {}]  }
   0x1   :  { %7 = vsyncpa [#allocation4], 0  ;;  %s102_s6 = smov [#allocation2]   ;;  %s54_s10 = scalar_lea.hbm %s138_s0, 256 }
   0x2   :  { %s14_s7 = sshll.u32 %s102_s6, 4  ;;  %p55_p0 = scmp.ne.s32.totalorder %s138_s0, %s54_s10  ;;  %s15_s7 = int_to_ptr.vmem [resolvable:$true] %s14_s7 }
   0x3   :  { %p58_p1 = scmp.lt.u32.totalorder %s54_s10, %s138_s0 }
   0x5   :  { %p60_p2 = pnand %p58_p1, %p55_p0 }
   0x7   :  { %63 = shalt.err (!%p60_p2)
}
   0x8   :  { %s64_s15 = scalar_lea.vmem %s15_s7, 256  ;;  %p69_p4 = scmp.lt.s32.totalorder %s15_s7, %s15_s7 }
   0x9   :  { %p65_p3 = scmp.ne.s32.totalorder %s15_s7, %s64_s15  ;;  %p70_p5 = scmp.lt.s32.totalorder %s64_s15, %s64_s15 }
   0xb   :  { %p71_p6 = por %p70_p5, %p69_p4 }
   0xd   :  { %p72_p7 = pnand %p71_p6, %p65_p3 }
   0xf   :  { %75 = shalt.err (!%p72_p7)
}
  0x10   :  { %17 = dma.hbm_to_vmem [thread:$0]  %s138_s0, 256, %s15_s7, [#allocation3]  }
  0x11   :  { %98 = dma.done.wait [#allocation3], 256  }
  0x12   :  { %99 = vsyncadd [#allocation3], 4294967040  ;;  %v21_v0 = vld [vmem:[#allocation2] sm:$0xff]  ;;  %v22_v1 = vld [vmem:[#allocation2 + $0x8] sm:$0xff]  ;;  %s103_s18 = smov [#allocation5]  }
  0x13   :  { %v23_v2 = vmul.f32 0.5, %v21_v0  ;;  %v24_v3 = vmul.f32 0.5, %v22_v1  ;;  %s39_s19 = sshll.u32 %s103_s18, 4  ;;  %s40_s19 = int_to_ptr.vmem [resolvable:$true] %s39_s19 }
  0x14   :  { %s76_s0 = scalar_lea.vmem %s40_s19, 256  ;;  %p81_p9 = scmp.lt.s32.totalorder %s40_s19, %s40_s19 }
  0x15   :  { %50 = vtanh.f32 %v23_v2  ;;  %p77_p8 = scmp.ne.s32.totalorder %s40_s19, %s76_s0  ;;  %p82_p10 = scmp.lt.s32.totalorder %s76_s0, %s76_s0 }
  0x16   :  { %52 = vtanh.f32 %v24_v3 }
  0x17   :  { %p83_p11 = por %p82_p10, %p81_p9 }
  0x19   :  { %p84_p12 = pnand %p83_p11, %p77_p8 }
  0x1f   :  { %v51_v4 = vpop.eup %50 }
  0x20   :  { %v53_v5 = vpop.eup %52  ;;  %v27_v6 = vmul.f32 0.25, %v51_v4 }
  0x21   :  { %v28_v7 = vmul.f32 0.25, %v53_v5 }
  0x22   :  { %v29_v8 = vadd.f32 0.75, %v27_v6 }
  0x23   :  { %v30_v9 = vadd.f32 0.75, %v28_v7 }
  0x24   :  { %31 = vst [vmem:[#allocation5] sm:$0xff] %v29_v8 }
  0x25   :  { %32 = vst [vmem:[#allocation5 + $0x8] sm:$0xff] %v30_v9 }
  0x26   :  { %87 = shalt.err (!%p84_p12)
}
  0x27   :  { %s88_s22 = scalar_lea.hbm %s139_s1, 256 }
  0x28   :  { %p89_p13 = scmp.ne.s32.totalorder %s139_s1, %s88_s22  ;;  %p92_p0 = scmp.lt.u32.totalorder %s88_s22, %s139_s1 }
  0x2a   :  { %p94_p1 = pnand %p92_p0, %p89_p13 }
  0x2c   :  { %97 = shalt.err (!%p94_p1)
}
  0x2d   :  { %42 = dma.vmem_to_hbm [thread:$0]  %s40_s19, 256, %s139_s1, [#allocation4]  }
  0x2e   :  { %100 = dma.done.wait [#allocation4], 256  }
  0x2f   :  { %101 = vsyncadd [#allocation4], 4294967040 }
  0x30   :  { %46 = vsyncpa [#allocation3], 1 }
  0x31   :  { %47 = vsyncpa [#allocation4], 1 }

</bundles_post_ra>
